<compile_context>
chip_gen: v7x
topology: tpu7x:2x2x1
jax: 0.10.0
libtpu: 0.0.40
codegen_flags: <defaults>
</compile_context>

<pallas_src>
import functools

import jax
import jax.numpy as jnp
from jax import lax
from jax.experimental import pallas as pl
from jax.experimental.pallas import tpu as pltpu


def _round_up(x, m):
    return (x + m - 1) // m * m


def _gce_kernel(x_ref, xt_ref, out_ref, *, q, num_classes, pack_factor,
                batch_size, tile_rows):
    """One grid step: partial GCE loss sum over a tile of packed batch rows.

    x_ref  : (tile_rows, pack_factor * num_classes) logits, native dtype.
    xt_ref : (tile_rows, pack_factor) target-class logits, float32.
    out_ref: (1, 128) float32 partial-sum slab (lane-dense store).
    """
    i = pl.program_id(0)
    C, F = num_classes, pack_factor

    # Clip in the native dtype (bf16 VALU packs 2 elems/lane on v6e/v7x), then
    # a single cast to f32 for the exp / divide math.  The +/-10 clamp also
    # bounds any block-padding garbage of a ragged last tile, so nothing
    # non-finite can leak past the validity select below; it also makes the
    # softmax max-subtraction unnecessary (exp range is [4.5e-5, 2.2e4]).
    x = jnp.clip(x_ref[...], -10.0, 10.0).astype(jnp.float32)      # (TB, F*C)
    e = jnp.exp(x)                                                  # EUP

    if F == 1:
        # Unpacked path (large C): plain per-row lane reduction.
        s = jnp.sum(e, axis=1, keepdims=True)                       # (TB, 1)
    else:
        # Segmented per-row sum on the idle MXU: (TB, F*C) @ (F*C, F) against
        # a 0/1 block-diagonal matrix.  e is split into bf16-exact pieces so
        # the sum keeps f32 accuracy even if the matmul takes a bf16 fast
        # path — pure insurance; the extra tiny matmuls hide under the DMA.
        lane = lax.broadcasted_iota(jnp.int32, (F * C, F), 0)
        seg = lax.broadcasted_iota(jnp.int32, (F * C, F), 1)
        m = ((lane >= seg * C) & (lane < (seg + 1) * C)).astype(jnp.float32)
        e0 = e.astype(jnp.bfloat16).astype(jnp.float32)
        r0 = e - e0
        e1 = r0.astype(jnp.bfloat16).astype(jnp.float32)
        e2 = r0 - e1
        s = (jnp.dot(e0, m, preferred_element_type=jnp.float32)
             + jnp.dot(e1, m, preferred_element_type=jnp.float32)
             + jnp.dot(e2, m, preferred_element_type=jnp.float32))  # (TB, F)

    # Numerator: exp of the (wrapper-gathered) target-class logit.  Only the
    # (TB, F)-sized divide is ever formed; the full prob matrix never exists.
    xt = jnp.clip(xt_ref[...], -10.0, 10.0)                         # (TB, F) f32
    yg = jnp.exp(xt) / s                                            # exact divide

    loss = (1.0 - yg ** q) / q                                      # (TB, F)

    # Mask wrapper row-padding and ragged-tile block padding via the global
    # (original, pre-packing) row index.  The clip above keeps padding finite,
    # so the select fully isolates it.
    row = lax.broadcasted_iota(jnp.int32, loss.shape, 0) + i * tile_rows
    orig = row * F + lax.broadcasted_iota(jnp.int32, loss.shape, 1)
    loss = jnp.where(orig < batch_size, loss, 0.0)

    # Lane-dense partial-sum slab for this grid step (unmasked 128-lane vst).
    out_ref[...] = jnp.broadcast_to(jnp.sum(loss), (1, 128))


def gce_loss(logits, targets, q=0.7):
    """Generalized Cross Entropy loss, mean-reduced over the batch."""
    B, C = logits.shape
    itemsize = jnp.dtype(logits.dtype).itemsize

    # --- O(B) index plumbing in the wrapper (heavy O(B*C) work stays in the
    # kernel): gather the target-class logit per sample.
    xt = jnp.take_along_axis(
        logits, targets.reshape(B, 1).astype(jnp.int32), axis=1
    ).astype(jnp.float32)                                           # (B, 1)

    # --- Small-C lane packing factor.  Prefer an F that divides B so the
    # packing reshape needs no padded copy of the logits.
    if C <= 64:
        f_max = 128 // C
        f_pow2 = 1 << (f_max.bit_length() - 1)
        if B % f_max == 0:
            F = f_max
        elif B % f_pow2 == 0:
            F = f_pow2
        else:
            F = f_max            # ragged: pad rows (one extra fused pass)
    else:
        F = 1
    R = pl.cdiv(B, F)            # packed rows
    pad_rows = R * F - B
    if pad_rows:
        logits_p = jnp.pad(logits, ((0, pad_rows), (0, 0)))
        xt_p = jnp.pad(xt, ((0, pad_rows), (0, 0)))
    else:
        logits_p, xt_p = logits, xt
    packed = logits_p.reshape(R, F * C)                             # native dtype
    xt_packed = xt_p.reshape(R, F)                                  # float32

    # --- Tile size & VMEM budget -------------------------------------------
    # Sublane pack: 8 rows for 4-byte, 16 for 2-byte, 32 for 1-byte dtypes.
    pack = max(8, 32 // max(1, itemsize))
    lane_pad = lambda n: _round_up(n, 128)
    # Per packed-row VMEM bytes: double-buffered native logits tile +
    # double-buffered f32 target-logit tile + f32 intermediates (x, e and the
    # bf16-split pieces; live set bounded by ~4 full-width f32 rows).
    row_bytes = (2 * lane_pad(F * C) * itemsize
                 + 2 * lane_pad(F) * 4
                 + 4 * lane_pad(F * C) * 4)
    vmem_budget = 36 * 1024 * 1024      # safe on v5e/v6e (128 MiB) and v7x (64 MiB)
    target_native = 4 * 1024 * 1024     # ~4 MiB of logits DMA per step (sweepable)
    tb = min(target_native // max(1, F * C * itemsize),
             vmem_budget // row_bytes)
    tb = max(pack, tb // pack * pack)
    tb = min(tb, _round_up(R, pack))
    if R >= 2 * pack:
        # Keep >= 2 grid steps so v7x can shard the batch axis over both TCs.
        tb = min(tb, _round_up(pl.cdiv(R, 2), pack))
    num_tiles = pl.cdiv(R, tb)
    # TODO(synk): vocab-scale C (one row tile over the VMEM budget) needs a
    # second grid axis with an online-softmax accumulator; out of scope here.

    kernel = functools.partial(
        _gce_kernel, q=float(q), num_classes=C, pack_factor=F,
        batch_size=B, tile_rows=tb)

    cost = pl.CostEstimate(
        flops=10 * B * C,
        transcendentals=B * C,
        bytes_accessed=B * C * itemsize + 8 * B + 512 * num_tiles)

    partials = pl.pallas_call(
        kernel,
        out_shape=jax.ShapeDtypeStruct((1, num_tiles * 128), jnp.float32),
        grid=(num_tiles,),
        in_specs=[
            pl.BlockSpec((tb, F * C), lambda i: (i, 0)),   # packed logits tile
            pl.BlockSpec((tb, F), lambda i: (i, 0)),       # target-logit tile
        ],
        out_specs=pl.BlockSpec((1, 128), lambda i: (0, i)),
        compiler_params=pltpu.CompilerParams(
            dimension_semantics=("parallel",),
            vmem_limit_bytes=44 * 1024 * 1024),
        cost_estimate=cost,
    )(packed, xt_packed)

    # Each step broadcast its partial sum over a 128-lane slab; take lane 0.
    total = jnp.sum(partials.reshape(num_tiles, 128)[:, 0])
    return total / B


def gce_loss_ref(logits, targets, q=0.7):
    """Pure-JAX reference matching the PyTorch module."""
    x = jnp.clip(logits.astype(jnp.float32), -10.0, 10.0)
    p = jax.nn.softmax(x, axis=1)
    yg = jnp.take_along_axis(p, targets[:, None].astype(jnp.int32), axis=1)
    return jnp.mean((1.0 - yg ** q) / q)


if __name__ == "__main__":
    key = jax.random.PRNGKey(0)
    k_logits, k_targets = jax.random.split(key)

    # Primary check: batch of 8 samples, 10 classes (matches module usage).
    B, C = 8, 10
    logits = jax.random.normal(k_logits, (B, C), dtype=jnp.float32) * 5.0
    targets = jax.random.randint(k_targets, (B,), 0, C, dtype=jnp.int32)
    loss = jax.block_until_ready(gce_loss(logits, targets, q=0.7))
    ref = gce_loss_ref(logits, targets, q=0.7)
    assert jnp.allclose(loss, ref, atol=1e-5, rtol=1e-5), (loss, ref)

    # bf16 logits exercise the narrow native-dtype DMA path.
    logits_bf16 = logits.astype(jnp.bfloat16)
    loss_b = jax.block_until_ready(gce_loss(logits_bf16, targets, q=0.7))
    ref_b = gce_loss_ref(logits_bf16.astype(jnp.float32), targets, q=0.7)
    assert jnp.allclose(loss_b, ref_b, atol=1e-5, rtol=1e-5), (loss_b, ref_b)

    # Ragged batch (B not a multiple of the packing factor / sublane pack).
    B2 = 5
    logits2 = jax.random.normal(k_logits, (B2, C), dtype=jnp.float32) * 5.0
    targets2 = jax.random.randint(k_targets, (B2,), 0, C, dtype=jnp.int32)
    loss2 = jax.block_until_ready(gce_loss(logits2, targets2, q=0.7))
    ref2 = gce_loss_ref(logits2, targets2, q=0.7)
    assert jnp.allclose(loss2, ref2, atol=1e-5, rtol=1e-5), (loss2, ref2)

    # Multi-tile packed path (>= 2 grid steps, ragged last tile).
    B3 = 240
    logits3 = jax.random.normal(k_logits, (B3, C), dtype=jnp.float32) * 5.0
    targets3 = jax.random.randint(k_targets, (B3,), 0, C, dtype=jnp.int32)
    loss3 = jax.block_until_ready(gce_loss(logits3, targets3, q=0.7))
    ref3 = gce_loss_ref(logits3, targets3, q=0.7)
    assert jnp.allclose(loss3, ref3, atol=1e-5, rtol=1e-5), (loss3, ref3)

    # Unpacked (F == 1) path for a wider class dimension.
    B4, C4 = 16, 200
    logits4 = jax.random.normal(k_logits, (B4, C4), dtype=jnp.float32) * 5.0
    targets4 = jax.random.randint(k_targets, (B4,), 0, C4, dtype=jnp.int32)
    loss4 = jax.block_until_ready(gce_loss(logits4, targets4, q=0.7))
    ref4 = gce_loss_ref(logits4, targets4, q=0.7)
    assert jnp.allclose(loss4, ref4, atol=1e-5, rtol=1e-5), (loss4, ref4)

    print("KERNEL_OK")
</pallas_src>

<mosaic_0001>
module attributes {stable_mosaic.version = 11 : i64} {
  func.func @_gce_kernel(%arg0: i32, %arg1: memref<8x80xf32, #tpu.memory_space<vmem>>, %arg2: memref<8x8xf32, #tpu.memory_space<vmem>>, %arg3: memref<1x128xf32, #tpu.memory_space<vmem>>) attributes {dimension_semantics = [#tpu.dimension_semantics<parallel>], iteration_bounds = array<i64: 1>, scalar_prefetch = 0 : i64, scratch_operands = 0 : i64, tpu.core_type = #tpu.core_type<tc>, window_params = [{transform_indices = @transform_0, window_bounds = array<i64: 8, 80>}, {transform_indices = @transform_1, window_bounds = array<i64: 8, 8>}, {transform_indices = @transform_2, window_bounds = array<i64: 1, 128>}]} {
    %c0 = arith.constant 0 : index
    %c0_0 = arith.constant 0 : index
    %0 = vector.load %arg1[%c0, %c0_0] : memref<8x80xf32, #tpu.memory_space<vmem>>, vector<8x80xf32>
    %cst = arith.constant -1.000000e+01 : f32
    %cst_1 = arith.constant 1.000000e+01 : f32
    %1 = vector.broadcast %cst : f32 to vector<8x80xf32>
    %2 = arith.maximumf %1, %0 : vector<8x80xf32>
    %3 = vector.broadcast %cst_1 : f32 to vector<8x80xf32>
    %4 = arith.minimumf %3, %2 : vector<8x80xf32>
    %5 = math.exp %4 : vector<8x80xf32>
    %6 = tpu.iota {dimensions = array<i32: 0>} : vector<80x8xi32>
    %7 = tpu.iota {dimensions = array<i32: 1>} : vector<80x8xi32>
    %c10_i32 = arith.constant 10 : i32
    %8 = vector.broadcast %c10_i32 : i32 to vector<80x8xi32>
    %9 = arith.muli %7, %8 : vector<80x8xi32>
    %10 = arith.cmpi sge, %6, %9 : vector<80x8xi32>
    %c1_i32 = arith.constant 1 : i32
    %11 = vector.broadcast %c1_i32 : i32 to vector<80x8xi32>
    %12 = arith.addi %7, %11 : vector<80x8xi32>
    %c10_i32_2 = arith.constant 10 : i32
    %13 = vector.broadcast %c10_i32_2 : i32 to vector<80x8xi32>
    %14 = arith.muli %12, %13 : vector<80x8xi32>
    %15 = arith.cmpi slt, %6, %14 : vector<80x8xi32>
    %16 = arith.andi %10, %15 : vector<80x8xi1>
    %17 = arith.extui %16 : vector<80x8xi1> to vector<80x8xi32>
    %18 = arith.sitofp %17 : vector<80x8xi32> to vector<80x8xf32>
    %19 = arith.truncf %5 : vector<8x80xf32> to vector<8x80xbf16>
    %20 = arith.extf %19 : vector<8x80xbf16> to vector<8x80xf32>
    %21 = arith.subf %5, %20 : vector<8x80xf32>
    %22 = arith.truncf %21 : vector<8x80xf32> to vector<8x80xbf16>
    %23 = arith.extf %22 : vector<8x80xbf16> to vector<8x80xf32>
    %24 = arith.subf %21, %23 : vector<8x80xf32>
    %cst_3 = arith.constant dense<0.000000e+00> : vector<8x8xf32>
    %25 = tpu.matmul %20, %18, %cst_3 {dimension_numbers = #tpu.dot_dimension_numbers<[1], [0], [0], [1], [0, 0, 1, 1], [], []>} : vector<8x80xf32>, vector<80x8xf32>, vector<8x8xf32> -> vector<8x8xf32>
    %cst_4 = arith.constant dense<0.000000e+00> : vector<8x8xf32>
    %26 = tpu.matmul %23, %18, %cst_4 {dimension_numbers = #tpu.dot_dimension_numbers<[1], [0], [0], [1], [0, 0, 1, 1], [], []>} : vector<8x80xf32>, vector<80x8xf32>, vector<8x8xf32> -> vector<8x8xf32>
    %27 = arith.addf %25, %26 : vector<8x8xf32>
    %cst_5 = arith.constant dense<0.000000e+00> : vector<8x8xf32>
    %28 = tpu.matmul %24, %18, %cst_5 {dimension_numbers = #tpu.dot_dimension_numbers<[1], [0], [0], [1], [0, 0, 1, 1], [], []>} : vector<8x80xf32>, vector<80x8xf32>, vector<8x8xf32> -> vector<8x8xf32>
    %29 = arith.addf %27, %28 : vector<8x8xf32>
    %c0_6 = arith.constant 0 : index
    %c0_7 = arith.constant 0 : index
    %30 = vector.load %arg2[%c0_6, %c0_7] : memref<8x8xf32, #tpu.memory_space<vmem>>, vector<8x8xf32>
    %cst_8 = arith.constant -1.000000e+01 : f32
    %cst_9 = arith.constant 1.000000e+01 : f32
    %31 = vector.broadcast %cst_8 : f32 to vector<8x8xf32>
    %32 = arith.maximumf %31, %30 : vector<8x8xf32>
    %33 = vector.broadcast %cst_9 : f32 to vector<8x8xf32>
    %34 = arith.minimumf %33, %32 : vector<8x8xf32>
    %35 = math.exp %34 : vector<8x8xf32>
    %36 = arith.divf %35, %29 : vector<8x8xf32>
    %cst_10 = arith.constant 0.699999988 : f32
    %37 = vector.broadcast %cst_10 : f32 to vector<8x8xf32>
    %38 = math.powf %36, %37 : vector<8x8xf32>
    %cst_11 = arith.constant 1.000000e+00 : f32
    %39 = vector.broadcast %cst_11 : f32 to vector<8x8xf32>
    %40 = arith.subf %39, %38 : vector<8x8xf32>
    %cst_12 = arith.constant 0.699999988 : f32
    %41 = vector.broadcast %cst_12 : f32 to vector<8x8xf32>
    %42 = arith.divf %40, %41 : vector<8x8xf32>
    %43 = tpu.iota {dimensions = array<i32: 0>} : vector<8x8xi32>
    %c8_i32 = arith.constant 8 : i32
    %44 = arith.muli %arg0, %c8_i32 : i32
    %45 = vector.broadcast %44 : i32 to vector<8x8xi32>
    %46 = arith.addi %43, %45 : vector<8x8xi32>
    %c8_i32_13 = arith.constant 8 : i32
    %47 = vector.broadcast %c8_i32_13 : i32 to vector<8x8xi32>
    %48 = arith.muli %46, %47 : vector<8x8xi32>
    %49 = tpu.iota {dimensions = array<i32: 1>} : vector<8x8xi32>
    %50 = arith.addi %48, %49 : vector<8x8xi32>
    %c8_i32_14 = arith.constant 8 : i32
    %51 = vector.broadcast %c8_i32_14 : i32 to vector<8x8xi32>
    %52 = arith.cmpi slt, %50, %51 : vector<8x8xi32>
    %cst_15 = arith.constant 0.000000e+00 : f32
    %53 = vector.broadcast %cst_15 : f32 to vector<8x8xf32>
    %54 = arith.select %52, %42, %53 : vector<8x8xi1>, vector<8x8xf32>
    %55 = vector.shape_cast %54 : vector<8x8xf32> to vector<1x8x8xf32>
    %cst_16 = arith.constant dense<0.000000e+00> : vector<1xf32>
    %56 = vector.multi_reduction <add>, %55, %cst_16 [1, 2] : vector<1x8x8xf32> to vector<1xf32>
    %57 = vector.shape_cast %56 : vector<1xf32> to vector<1x1x1xf32>
    %58 = vector.extract %57[0, 0, 0] : f32 from vector<1x1x1xf32>
    %59 = vector.broadcast %58 : f32 to vector<1x128xf32>
    %c0_17 = arith.constant 0 : index
    %c0_18 = arith.constant 0 : index
    %60 = vector.load %arg3[%c0_17, %c0_18] : memref<1x128xf32, #tpu.memory_space<vmem>>, vector<1x128xf32>
    tpu.vector_store %arg3[%c0_17, %c0_18], %59 {strides = array<i32>} : memref<1x128xf32, #tpu.memory_space<vmem>>, vector<1x128xf32>,
    return
  }
  func.func @transform_0(%arg0: i32) -> (i32, i32) {
    %c0_i32 = arith.constant 0 : i32
    %c0_i32_0 = arith.constant 0 : i32
    return %arg0, %c0_i32 : i32, i32
  }
  func.func @transform_1(%arg0: i32) -> (i32, i32) {
    %c0_i32 = arith.constant 0 : i32
    %c0_i32_0 = arith.constant 0 : i32
    return %arg0, %c0_i32 : i32, i32
  }
  func.func @transform_2(%arg0: i32) -> (i32, i32) {
    %c0_i32 = arith.constant 0 : i32
    %c0_i32_0 = arith.constant 0 : i32
    return %c0_i32, %arg0 : i32, i32
  }
}

</mosaic_0001>

<bundles_post_ra>
// kernel: tpu_custom_call.1
= control target key start
LH: loop header
LB: loop body
LE: loop exit
PB: predicated region body
PF: predicated region fallthrough
CT: control target
= control target key end

     0   :  { %7 = vsyncpa [#allocation3], 0  ;;  %s817_s0 = inlined_call_operand.hbm [shape: f32[1,80], index: 0, kind: input, shape index: {}]   ;;  %s818_s1 = inlined_call_operand.vmem [shape: f32[1,8], index: 1, kind: input, shape index: {}]   ;;  %s819_s2 = inlined_call_operand.hbm [shape: f32[1,128], index: 2, kind: output, shape index: {}]  }
   0x1   :  { %8 = vsyncpa [#allocation4], 0 }
   0x2   :  { %13 = vsyncadd [#allocation3], 112  ;;  %s659_s9 = smov [#allocation2]   ;;  %s611_s13 = scalar_lea.hbm %s817_s0, 16 }
   0x3   :  { %s14_s10 = sshll.u32 %s659_s9, 4  ;;  %p612_p0 = scmp.ne.s32.totalorder %s817_s0, %s611_s13  ;;  %s15_s10 = int_to_ptr.vmem [resolvable:$true] %s14_s10 }
   0x4   :  { %p615_p1 = scmp.lt.u32.totalorder %s611_s13, %s817_s0 }
   0x6   :  { %p617_p2 = pnand %p615_p1, %p612_p0 }
   0x8   :  { %620 = shalt.err (!%p617_p2)
}
   0x9   :  { %s621_s18 = scalar_lea.vmem %s15_s10, 16  ;;  %s625_s19 = scalar_lea.vmem %s15_s10, 128 }
   0xa   :  { %p622_p3 = scmp.ne.s32.totalorder %s15_s10, %s621_s18  ;;  %p626_p4 = scmp.lt.s32.totalorder %s15_s10, %s15_s10 }
   0xb   :  { %p627_p5 = scmp.lt.s32.totalorder %s625_s19, %s621_s18 }
   0xd   :  { %p628_p6 = por %p627_p5, %p626_p4 }
   0xf   :  { %p629_p7 = pnand %p628_p6, %p622_p3 }
  0x11   :  { %632 = shalt.err (!%p629_p7)
}
  0x12   :  { %s660_s20 = smov 16   ;;  %s661_s21 = smov 1  }
  0x13   :  { %20 = dma.hbm_to_vmem [thread:$0]  %s817_s0, 16, %s15_s10, [#allocation3], %s660_s20, %s660_s20, %s661_s21  }
  0x14   :  { %655 = dma.done.wait [#allocation3], 128  }
  0x15   :  { %656 = vsyncadd [#allocation3], 4294967168  ;;  %v31_v0 = vlaneseq  ;;  %v662_v1 = vmov 0.0|0.0   ;;  %vm820_vm0 = vmmov 0   ;;  %v664_v4 = vmov 0.0   ;;  %v26_v12 = vld [vmem:[#allocation2] sm:$0xff] }
  0x16   :  { %532 = vmatprep.subr.bf16.mxu0 %v662_v1  ;;  %517 = vmatprep.subr.bf16.mxu1 %v662_v1  ;;  %v370_v16 = vclamps-f32 %v26_v12, 10.0  ;;  %v665_v17 = vmov 1.0|1.0   ;;  %v324_v35 = vld [vmem:[%s818_s1] sm:$0xff]  ;;  %s666_s1 = smov [#allocation5]  }
  0x17   :  { %v696_v2 = vshrl.u32 %v31_v0, 7  ;;  %v698_v3 = vand.u32 127, %v31_v0  ;;  %491 = vmatprep.mubr.msk.f32.mxu0 %vm820_vm0, %v664_v4  ;;  %468 = vmatprep.mubr.msk.f32.mxu1 %vm820_vm0, %v664_v4  ;;  %v414_v36 = vclamps-f32 %v324_v35, 10.0  ;;  %s361_s25 = sshll.u32 %s666_s1, 4  ;;  %s362_s25 = int_to_ptr.vmem [resolvable:$true] %s361_s25 }
  0x18   :  { %v29_v19 = vmul.f32 1.442695, %v370_v16  ;;  %s633_s27 = scalar_lea.vmem %s362_s25, 16  ;;  %s637_s28 = scalar_lea.vmem %s362_s25, 32 }
  0x19   :  { %v33_v5 = vadd.s32 8, %v696_v2  ;;  %v44_v6 = vmul.u32 10, %v698_v3  ;;  %v55_v7 = vadd.s32 1, %v698_v3  ;;  %v34_v8 = vadd.s32 16, %v696_v2  ;;  %p634_p8 = scmp.ne.s32.totalorder %s362_s25, %s633_s27  ;;  %p638_p9 = scmp.lt.s32.totalorder %s362_s25, %s362_s25 }
  0x1a   :  { %v35_v10 = vadd.s32 24, %v696_v2  ;;  %v36_v11 = vadd.s32 32, %v696_v2  ;;  %v37_v13 = vadd.s32 40, %v696_v2  ;;  %v38_v15 = vadd.s32 48, %v696_v2  ;;  %p639_p10 = scmp.lt.s32.totalorder %s637_s28, %s633_s27 }
  0x1b   :  { %vm45_vm1 = vcmp.ge.s32.totalorder %v696_v2, %v44_v6  ;;  %v56_v9 = vmul.u32 10, %v55_v7  ;;  %vm46_vm2 = vcmp.ge.s32.totalorder %v33_v5, %v44_v6  ;;  %vm47_vm6 = vcmp.ge.s32.totalorder %v34_v8, %v44_v6 }
  0x1c   :  { %vm48_vm9 = vcmp.ge.s32.totalorder %v35_v10, %v44_v6  ;;  %vm49_vm13 = vcmp.ge.s32.totalorder %v36_v11, %v44_v6  ;;  %v39_v18 = vadd.s32 56, %v696_v2  ;;  %v40_v21 = vadd.s32 64, %v696_v2  ;;  %p640_p11 = por %p639_p10, %p638_p9 }
  0x1d   :  { %vm57_vm3 = vcmp.lt.s32.totalorder %v696_v2, %v56_v9  ;;  %vm58_vm4 = vcmp.lt.s32.totalorder %v33_v5, %v56_v9  ;;  %vm59_vm7 = vcmp.lt.s32.totalorder %v34_v8, %v56_v9  ;;  %vm60_vm10 = vcmp.lt.s32.totalorder %v35_v10, %v56_v9 }
  0x1e   :  { %vm67_vm5 = vmand %vm45_vm1, %vm57_vm3  ;;  %vm61_vm14 = vcmp.lt.s32.totalorder %v36_v11, %v56_v9  ;;  %vm50_vm1 = vcmp.ge.s32.totalorder %v37_v13, %v44_v6  ;;  %v41_v22 = vadd.s32 72, %v696_v2  ;;  %601 = vpow2.f32 %v29_v19  ;;  %p641_p12 = pnand %p640_p11, %p634_p8 }
  0x1f   :  { %vm68_vm8 = vmand %vm46_vm2, %vm58_vm4  ;;  %vm62_vm2 = vcmp.lt.s32.totalorder %v37_v13, %v56_v9  ;;  %v327_v37 = vmul.f32 1.442695, %v414_v36  ;;  %v338_v47 = vmul.u32 8, %v696_v2 }
  0x20   :  { %vm713_vm11 = vmpackc.low %vm68_vm8, %vm67_vm5  ;;  %vm51_vm5 = vcmp.ge.s32.totalorder %v38_v15, %v44_v6  ;;  %vm52_vm8 = vcmp.ge.s32.totalorder %v39_v18, %v44_v6  ;;  %vm54_vm0 = vcmp.ge.s32.totalorder %v41_v22, %v44_v6 }
  0x21   :  { %534 = vmatpush3.bf16.msk.msra.mxu0 %vm713_vm11, %v665_v17  ;;  %vm69_vm12 = vmand %vm47_vm6, %vm59_vm7  ;;  %519 = vmatpush3.bf16.msk.msra.mxu1 %vm713_vm11, %v665_v17  ;;  %vm63_vm6 = vcmp.lt.s32.totalorder %v38_v15, %v56_v9  ;;  %603 = vpow2.f32 %v327_v37  ;;  %v339_v52 = vadd.s32 %v338_v47, %v698_v3 }
  0x22   :  { %535 = vmatprep.subr.bf16.mxu0 %v662_v1  ;;  %vm70_vm15 = vmand %vm48_vm9, %vm60_vm10  ;;  %520 = vmatprep.subr.bf16.mxu1 %v662_v1  ;;  %vm64_vm9 = vcmp.lt.s32.totalorder %v39_v18, %v56_v9 }
  0x23   :  { %vm726_vm3 = vmpackc.low %vm70_vm15, %vm69_vm12 }
  0x24   :  { %vm71_vm4 = vmand %vm49_vm13, %vm61_vm14  ;;  %vm53_vm13 = vcmp.ge.s32.totalorder %v40_v21, %v44_v6  ;;  %vm65_vm14 = vcmp.lt.s32.totalorder %v40_v21, %v56_v9 }
  0x25   :  { %537 = vmatpush3.bf16.msk.msra.mxu0 %vm726_vm3, %v665_v17  ;;  %vm72_vm7 = vmand %vm50_vm1, %vm62_vm2  ;;  %522 = vmatpush3.bf16.msk.msra.mxu1 %vm726_vm3, %v665_v17  ;;  %vm66_vm1 = vcmp.lt.s32.totalorder %v41_v22, %v56_v9 }
  0x26   :  { %538 = vmatprep.subr.bf16.mxu0 %v662_v1  ;;  %vm737_vm10 = vmpackc.low %vm72_vm7, %vm71_vm4  ;;  %523 = vmatprep.subr.bf16.mxu1 %v662_v1  ;;  %vm831_vm7 = vmmov 0  }
  0x27   :  { %vm73_vm12 = vmand %vm51_vm5, %vm63_vm6 }
  0x28   :  { %vm74_vm15 = vmand %vm52_vm8, %vm64_vm9  ;;  %v602_v25 = vpop.eup %601 }
  0x29   :  { %540 = vmatpush3.bf16.msk.msra.mxu0 %vm737_vm10, %v665_v17  ;;  %vm748_vm2 = vmpackc.low %vm74_vm15, %vm73_vm12  ;;  %525 = vmatpush3.bf16.msk.msra.mxu1 %vm737_vm10, %v665_v17  ;;  %v97_v27 = vpack.c.bf16 %v602_v25, %v602_v25  ;;  %vm340_vm12 = vcmp.lt.s32.totalorder %v339_v52, 8 }
  0x2a   :  { %541 = vmatprep.subr.bf16.mxu0 %v662_v1  ;;  %vm75_vm4 = vmand %vm53_vm13, %vm65_vm14  ;;  %526 = vmatprep.subr.bf16.mxu1 %v662_v1  ;;  %vm342_vm13 = vcmask 64512  }
  0x2b   :  { %vm76_vm5 = vmand %vm54_vm0, %vm66_vm1  ;;  %v98_v28 = vunpack.c.l.bf16 %v97_v27  ;;  %vm103_vm0 = vcmask 654336   ;;  %v604_v41 = vpop.eup %603 }
  0x2c   :  { %vm761_vm6 = vmpackc.low %vm76_vm5, %vm75_vm4 }
  0x2d   :  { %543 = vmatpush3.bf16.msk.msra.mxu0 %vm748_vm2, %v665_v17  ;;  %528 = vmatpush3.bf16.msk.msra.mxu1 %vm748_vm2, %v665_v17  ;;  %v99_v29 = vsub.f32 %v602_v25, %v98_v28 }
  0x2e   :  { %544 = vmatprep.subr.bf16.mxu0 %v662_v1  ;;  %529 = vmatprep.subr.bf16.mxu1 %v662_v1 }
  0x2f   :  { %v100_v30 = vpack.c.bf16 %v99_v29, %v99_v29 }
  0x31   :  { %546 = vmatpush3.bf16.msk.msra.mxu0 %vm761_vm6, %v665_v17  ;;  %531 = vmatpush3.bf16.msk.msra.mxu1 %vm761_vm6, %v665_v17  ;;  %v101_v31 = vunpack.c.l.bf16 %v100_v30 }
  0x32   :  { %547 = vmatprep.subr.bf16.mxu0 %v662_v1 }
  0x33   :  { %v102_v32 = vsub.f32 %v99_v29, %v101_v31 }
  0x34   :  { %492 = vmatmul.mubr.msk.f32.vlgmr.msra.gmra.mrb[0].mxu0 %vm103_vm0, %v98_v28  ;;  %469 = vmatmul.mubr.msk.f32.vlgmr.msra.gmra.mrb[0].mxu1 %vm103_vm0, %v101_v31 }
  0x35   :  { %549 = vmatpush3.bf16.msk.msra.mxu0 %vm713_vm11, %v665_v17  ;;  %514 = vmatprep.mubr.msk.f32.mxu0 %vm831_vm7, %v664_v4 }
  0x36   :  { %550 = vmatprep.subr.bf16.mxu0 %v662_v1 }
  0x39   :  { %552 = vmatpush3.bf16.msk.msra.mxu0 %vm726_vm3, %v665_v17 }
  0x3a   :  { %553 = vmatprep.subr.bf16.mxu0 %v662_v1 }
  0x3d   :  { %555 = vmatpush3.bf16.msk.msra.mxu0 %vm737_vm10, %v665_v17 }
  0x3e   :  { %556 = vmatprep.subr.bf16.mxu0 %v662_v1 }
  0x41   :  { %558 = vmatpush3.bf16.msk.msra.mxu0 %vm748_vm2, %v665_v17 }
  0x42   :  { %559 = vmatprep.subr.bf16.mxu0 %v662_v1 }
  0x45   :  { %561 = vmatpush3.bf16.msk.msra.mxu0 %vm761_vm6, %v665_v17 }
  0x48   :  { %515 = vmatmul.mubr.msk.f32.vlgmr.msra.gmra.mrb[0].mxu0 %vm103_vm0, %v102_v32 }
 0x107   :  { %v173_v33 = vpop.f32.mrb[0].mxu1 }
 0x108   :  { %v470_v34 = vpop.f32.mrb[1].mxu1 }
 0x11b   :  { %v319_v38 = vpop.f32.mrb[0].mxu0 }
 0x11c   :  { %v562_v39 = vadd.f32 %v319_v38, %v173_v33  ;;  %v516_v40 = vpop.f32.mrb[1].mxu0 }
 0x11e   :  { %605 = vrcp.f32 %v562_v39 }
 0x128   :  { %v606_v42 = vpop.eup %605 }
 0x129   :  { %v330_v43 = vmul.f32 %v606_v42, %v604_v41 }
 0x12b   :  { %v569_v44 = vand.u32 2147483647, %v330_v43  ;;  %vm573_vm11 = vcmp.lt.f32.partialorder %v330_v43, 0  ;;  %vm574_vm3 = vcmp.eq.f32.partialorder %v330_v43, 0  ;;  %vm586_vm9 = vcmp.ne.f32.partialorder %v330_v43, %v330_v43 }
 0x12c   :  { %vm575_vm10 = vcmp.eq.f32.partialorder %v330_v43, 1065353216 }
 0x12d   :  { %607 = vlog2.f32 %v569_v44  ;;  %vm578_vm8 = vcmp.eq.f32.partialorder %v569_v44, 2139095040 }
 0x137   :  { %v608_v45 = vpop.eup %607 }
 0x138   :  { %v571_v46 = vmul.f32 0.7, %v608_v45 }
 0x13a   :  { %609 = vpow2.f32 %v571_v46 }
 0x144   :  { %v610_v48 = vpop.eup %609 }
 0x145   :  { %v579_v49 = vsel %vm573_vm11, 2143289344, %v610_v48 }
 0x146   :  { %v580_v50 = vsel %vm574_vm3, 0, %v579_v49 }
 0x147   :  { %v585_v51 = vsel %vm578_vm8, 2139095040, %v580_v50 }
 0x148   :  { %v589_v53 = vsel %vm586_vm9, 2143289344, %v585_v51 }
 0x149   :  { %v590_v54 = vsel %vm575_vm10, 1065353216, %v589_v53 }
 0x14a   :  { %v332_v55 = vsub.f32 1.0, %v590_v54 }
 0x14c   :  { %v334_v56 = vmul.f32 1.4285715, %v332_v55 }
 0x14e   :  { %v341_v57 = vsel %vm340_vm12, %v334_v56, 0.0 }
 0x14f   :  { %v343_v58 = vsel %vm342_vm13, %v341_v57, 0.0 }
 0x150   :  { %344 = vadd.xlane.f32.xlu0 %v343_v58 }
 0x1dd   :  { %v345_v59 = vpop.xlane.xlu0 %344 }
 0x1de   :  { %v346_v60 = vrot.slane %v345_v59, 4 }
 0x1e0   :  { %v347_v61 = vadd.f32 %v346_v60, %v345_v59 }
 0x1e2   :  { %v348_v62 = vrot.slane %v347_v61, 2 }
 0x1e4   :  { %v349_v63 = vadd.f32 %v348_v62, %v347_v61 }
 0x1e6   :  { %v350_v0 = vrot.slane %v349_v63, 1 }
 0x1e8   :  { %v351_v1 = vadd.f32 %v350_v0, %v349_v63 }
 0x1ea   :  { %591 = vpush %v351_v1 }
 0x21b   :  { %s592_s26 = spop %591 }
 0x21c   :  { %v353_v2 = vstv %s592_s26 }
 0x21d   :  { %354 = vst [vmem:[#allocation5] sm:$0x1] %v353_v2 }
 0x21e   :  { %644 = shalt.err (!%p641_p12)
}
 0x21f   :  { %s645_s3 = scalar_lea.hbm %s819_s2, 16 }
 0x220   :  { %p646_p13 = scmp.ne.s32.totalorder %s819_s2, %s645_s3  ;;  %p649_p0 = scmp.lt.u32.totalorder %s645_s3, %s819_s2 }
 0x222   :  { %p651_p1 = pnand %p649_p0, %p646_p13 }
 0x224   :  { %654 = shalt.err (!%p651_p1)
}
 0x225   :  { %364 = dma.vmem_to_hbm [thread:$0]  %s362_s25, 16, %s819_s2, [#allocation4]  }
 0x226   :  { %657 = dma.done.wait [#allocation4], 16  }
 0x227   :  { %658 = vsyncadd [#allocation4], 4294967280 }
 0x228   :  { %368 = vsyncpa [#allocation3], 1 }
 0x229   :  { %369 = vsyncpa [#allocation4], 1 }

</bundles_post_ra>
